<compile_context>
chip_gen: v7x
topology: tpu7x:2x2x1
jax: 0.10.0
libtpu: 0.0.40
codegen_flags: <defaults>
</compile_context>

<pallas_src>
import functools

import jax
import jax.numpy as jnp
from jax.experimental import pallas as pl
from jax.experimental.pallas import tpu as pltpu

_BP = 8  # batch rows per tile = one sublane group


# ----------------------------- Pallas kernel ------------------------------ #
def lstm_fc_kernel(xw_ref, whh_ref, wfc_ref, bfc_ref, out_ref, *, seq_len):
    """LSTM recurrence (input projection pre-applied) + Linear on h_T.

    xw_ref:  (T*8, 4H)  f32   time-major per 8-sequence tile, bias included
    whh_ref: (H, 4H)    bf16
    wfc_ref: (H, O_pad) bf16
    bfc_ref: (1, O_pad) f32
    out_ref: (8, O_pad) f32
    """
    H = whh_ref.shape[0]
    G = 4 * H

    # --- hoisted per-lane activation constants (single-tanh trick) ---------
    #   sigmoid(x) = 0.5 * tanh(x / 2) + 0.5   on i / f / o lanes
    #   tanh(x)    = 1.0 * tanh(x)     + 0.0   on the g lane block
    lane = jax.lax.broadcasted_iota(jnp.int32, (_BP, G), 1)
    g_blk = (lane >= 2 * H) & (lane < 3 * H)
    scale = jnp.where(g_blk, 1.0, 0.5).astype(jnp.float32)   # pre AND post scale
    offset = jnp.where(g_blk, 0.0, 0.5).astype(jnp.float32)

    whh = whh_ref[...]                                        # (H, 4H) bf16

    # h0 = c0 = 0 (torch default when no (h0, c0) is passed); carried in vregs
    h = jnp.zeros((_BP, H), jnp.float32)
    c = jnp.zeros((_BP, H), jnp.float32)

    # fully unrolled recurrence (seq_len is static and small)
    for t in range(seq_len):
        xw_t = xw_ref[t * _BP:(t + 1) * _BP, :]               # one (8,128) vreg
        gates = xw_t + jnp.dot(h.astype(whh.dtype), whh,
                               preferred_element_type=jnp.float32)   # (8, 4H)
        # single EUP pass for all four gates
        act = jnp.tanh(gates * scale) * scale + offset
        i_g = act[:, 0 * H:1 * H]
        f_g = act[:, 1 * H:2 * H]
        g_g = act[:, 2 * H:3 * H]
        o_g = act[:, 3 * H:4 * H]
        c = f_g * c + i_g * g_g
        h = o_g * jnp.tanh(c)

    # fc on the last hidden state (bf16 MXU operands, f32 accumulate,
    # lane-dense unmasked store)
    out_ref[...] = (jnp.dot(h.astype(jnp.bfloat16), wfc_ref[...],
                            preferred_element_type=jnp.float32)
                    + bfc_ref[...])


def lstm_fc_pallas(xw, whh, wfc, bfc, *, seq_len, n_tiles):
    G = xw.shape[1]            # 4H
    H = whh.shape[0]
    O = wfc.shape[1]           # already padded to a multiple of 128 by caller

    kernel = functools.partial(lstm_fc_kernel, seq_len=seq_len)

    grid_spec = pltpu.PrefetchScalarGridSpec(
        num_scalar_prefetch=0,
        grid=(n_tiles,),
        in_specs=[
            pl.BlockSpec((seq_len * _BP, G), lambda i: (i, 0)),   # per-tile slab
            pl.BlockSpec((H, G), lambda i: (0, 0)),
            pl.BlockSpec((H, O), lambda i: (0, 0)),
            pl.BlockSpec((1, O), lambda i: (0, 0)),
        ],
        out_specs=pl.BlockSpec((_BP, O), lambda i: (i, 0)),
    )
    # Each 8-sequence batch tile is independent -> "parallel": pipelines the
    # next tile's DMA behind the current recurrence and lets v7x shard tiles
    # across both TensorCores when n_tiles > 1.
    return pl.pallas_call(
        kernel,
        out_shape=jax.ShapeDtypeStruct((n_tiles * _BP, O), jnp.float32),
        grid_spec=grid_spec,
        compiler_params=pltpu.CompilerParams(
            dimension_semantics=("parallel",)),
    )(xw, whh, wfc, bfc)


# ------------------------------ JAX wrapper -------------------------------- #
@functools.partial(jax.jit, static_argnums=(2,))
def rnn_forward(x, params, vocab_size):
    """Mirrors RNN.forward: one-hot encode pitch, LSTM, fc on last step.

    x: (B, T, 3) float32; x[:, :, 0] holds integer pitch values in
       [0, vocab_size), x[:, :, 1:] are two extra float features.
    """
    B, T, _ = x.shape
    pitch = x[:, :, 0].astype(jnp.int32)
    feats = x[:, :, 1:]                                       # (B, T, 2)
    wih = params["wih"]                                       # (V+2, 4H)

    # one_hot(pitch) @ W_ih is a row gather; the two extra features hit the
    # last two rows of W_ih.  Bias folded in here (exact f32).
    xw = (jnp.take(wih[:vocab_size], pitch, axis=0)           # (B, T, 4H)
          + feats @ wih[vocab_size:]                          # (B,T,2)@(2,4H)
          + params["b"])                                      # (1, 4H) bcast

    # pad batch to a multiple of 8 (one sublane tile), lay out tile/time-major
    n_tiles = pl.cdiv(B, _BP)
    b_pad = n_tiles * _BP
    xw = jnp.pad(xw, ((0, b_pad - B), (0, 0), (0, 0)))
    # (n_tiles, 8, T, 4H) -> (n_tiles, T, 8, 4H) -> (n_tiles*T*8, 4H)
    xw = xw.reshape(n_tiles, _BP, T, -1).transpose(0, 2, 1, 3)
    xw = xw.reshape(n_tiles * T * _BP, -1)

    O = params["wfc"].shape[1]
    o_pad = 128 * pl.cdiv(O, 128)            # lane-dense (unmasked) output store
    wfc_p = jnp.pad(params["wfc"], ((0, 0), (0, o_pad - O))).astype(jnp.bfloat16)
    bfc_p = jnp.pad(params["bfc"], ((0, 0), (0, o_pad - O)))

    out = lstm_fc_pallas(
        xw,                                        # f32 pre-projected input
        params["whh"].astype(jnp.bfloat16),        # bf16 MXU operand
        wfc_p, bfc_p,
        seq_len=T, n_tiles=n_tiles)
    return out[:B, :O]


# pure-JAX f32 reference (same math, lax.scan) for a correctness check
def rnn_reference(x, params, vocab_size):
    pitch = x[:, :, 0].astype(jnp.int32)
    one_hot = jax.nn.one_hot(pitch, vocab_size, dtype=jnp.float32)
    inp = jnp.concatenate([one_hot, x[:, :, 1:]], axis=-1)
    x_tbd = jnp.transpose(inp, (1, 0, 2))
    B = x.shape[0]
    H = params["whh"].shape[0]

    def step(carry, x_t):
        h, c = carry
        gates = x_t @ params["wih"] + h @ params["whh"] + params["b"]
        i = jax.nn.sigmoid(gates[:, 0 * H:1 * H])
        f = jax.nn.sigmoid(gates[:, 1 * H:2 * H])
        g = jnp.tanh(gates[:, 2 * H:3 * H])
        o = jax.nn.sigmoid(gates[:, 3 * H:4 * H])
        c = f * c + i * g
        h = o * jnp.tanh(c)
        return (h, c), None

    h0 = jnp.zeros((B, H), jnp.float32)
    c0 = jnp.zeros((B, H), jnp.float32)
    (h, _), _ = jax.lax.scan(step, (h0, c0), x_tbd)
    return h @ params["wfc"] + params["bfc"]


def init_params(key, vocab_size, hidden_size, out_size=88):
    """Deterministic init matching torch LSTM/Linear shapes (U(-k, k))."""
    d_in = vocab_size + 2
    k_lstm = 1.0 / jnp.sqrt(hidden_size)
    k_fc = 1.0 / jnp.sqrt(hidden_size)
    ks = jax.random.split(key, 6)
    wih = jax.random.uniform(ks[0], (d_in, 4 * hidden_size),
                             minval=-k_lstm, maxval=k_lstm, dtype=jnp.float32)
    whh = jax.random.uniform(ks[1], (hidden_size, 4 * hidden_size),
                             minval=-k_lstm, maxval=k_lstm, dtype=jnp.float32)
    b_ih = jax.random.uniform(ks[2], (1, 4 * hidden_size),
                              minval=-k_lstm, maxval=k_lstm, dtype=jnp.float32)
    b_hh = jax.random.uniform(ks[3], (1, 4 * hidden_size),
                              minval=-k_lstm, maxval=k_lstm, dtype=jnp.float32)
    wfc = jax.random.uniform(ks[4], (hidden_size, out_size),
                             minval=-k_fc, maxval=k_fc, dtype=jnp.float32)
    bfc = jax.random.uniform(ks[5], (1, out_size),
                             minval=-k_fc, maxval=k_fc, dtype=jnp.float32)
    return {"wih": wih, "whh": whh, "b": b_ih + b_hh, "wfc": wfc, "bfc": bfc}


if __name__ == "__main__":
    # Small shapes: vocab_size=126 -> LSTM input dim 128, hidden=32, batch=2, seq=8
    VOCAB, HIDDEN, B, T = 126, 32, 2, 8

    key = jax.random.PRNGKey(0)
    k_pitch, k_feat, k_param = jax.random.split(key, 3)

    pitch = jax.random.randint(k_pitch, (B, T, 1), 0, VOCAB).astype(jnp.float32)
    feats = jax.random.uniform(k_feat, (B, T, 2), dtype=jnp.float32)
    x = jnp.concatenate([pitch, feats], axis=-1)          # (B, T, 3)

    params = init_params(k_param, VOCAB, HIDDEN)

    out = rnn_forward(x, params, VOCAB)
    jax.block_until_ready(out)
    assert out.shape == (B, 88), out.shape

    ref = rnn_reference(x, params, VOCAB)
    max_err = float(jnp.max(jnp.abs(out - ref)))
    # bf16 MXU operands (W_hh / W_fc / h) vs pure-f32 reference -> ~1e-2 level
    assert jnp.allclose(out, ref, atol=2e-2, rtol=2e-2), max_err

    print("KERNEL_OK")
</pallas_src>

<mosaic_0001>
module attributes {stable_mosaic.version = 11 : i64} {
  func.func @lstm_fc_kernel(%arg0: i32, %arg1: memref<64x128xf32, #tpu.memory_space<vmem>>, %arg2: memref<32x128xbf16, #tpu.memory_space<vmem>>, %arg3: memref<32x128xbf16, #tpu.memory_space<vmem>>, %arg4: memref<1x128xf32, #tpu.memory_space<vmem>>, %arg5: memref<8x128xf32, #tpu.memory_space<vmem>>) attributes {dimension_semantics = [#tpu.dimension_semantics<parallel>], iteration_bounds = array<i64: 1>, scalar_prefetch = 0 : i64, scratch_operands = 0 : i64, tpu.core_type = #tpu.core_type<tc>, window_params = [{transform_indices = @transform_0, window_bounds = array<i64: 64, 128>}, {pipeline_mode = #tpu.pipeline_mode<synchronous>, transform_indices = @transform_1, window_bounds = array<i64: 32, 128>}, {pipeline_mode = #tpu.pipeline_mode<synchronous>, transform_indices = @transform_2, window_bounds = array<i64: 32, 128>}, {pipeline_mode = #tpu.pipeline_mode<synchronous>, transform_indices = @transform_3, window_bounds = array<i64: 1, 128>}, {transform_indices = @transform_4, window_bounds = array<i64: 8, 128>}]} {
    %0 = tpu.iota {dimensions = array<i32: 1>} : vector<8x128xi32>
    %c64_i32 = arith.constant 64 : i32
    %1 = vector.broadcast %c64_i32 : i32 to vector<8x128xi32>
    %2 = arith.cmpi sge, %0, %1 : vector<8x128xi32>
    %c96_i32 = arith.constant 96 : i32
    %3 = vector.broadcast %c96_i32 : i32 to vector<8x128xi32>
    %4 = arith.cmpi slt, %0, %3 : vector<8x128xi32>
    %5 = arith.andi %2, %4 : vector<8x128xi1>
    %cst = arith.constant 1.000000e+00 : f32
    %cst_0 = arith.constant 5.000000e-01 : f32
    %6 = vector.broadcast %cst : f32 to vector<8x128xf32>
    %7 = vector.broadcast %cst_0 : f32 to vector<8x128xf32>
    %8 = arith.select %5, %6, %7 : vector<8x128xi1>, vector<8x128xf32>
    %cst_1 = arith.constant 0.000000e+00 : f32
    %cst_2 = arith.constant 5.000000e-01 : f32
    %9 = vector.broadcast %cst_1 : f32 to vector<8x128xf32>
    %10 = vector.broadcast %cst_2 : f32 to vector<8x128xf32>
    %11 = arith.select %5, %9, %10 : vector<8x128xi1>, vector<8x128xf32>
    %c0 = arith.constant 0 : index
    %c0_3 = arith.constant 0 : index
    %12 = vector.load %arg2[%c0, %c0_3] : memref<32x128xbf16, #tpu.memory_space<vmem>>, vector<32x128xbf16>
    %cst_4 = arith.constant 0.000000e+00 : f32
    %13 = vector.broadcast %cst_4 : f32 to vector<8x32xf32>
    %cst_5 = arith.constant 0.000000e+00 : f32
    %14 = vector.broadcast %cst_5 : f32 to vector<8x32xf32>
    %c0_6 = arith.constant 0 : index
    %c0_7 = arith.constant 0 : index
    %15 = vector.load %arg1[%c0_6, %c0_7] : memref<64x128xf32, #tpu.memory_space<vmem>>, vector<8x128xf32>
    %16 = arith.truncf %13 : vector<8x32xf32> to vector<8x32xbf16>
    %cst_8 = arith.constant dense<0.000000e+00> : vector<8x128xf32>
    %17 = tpu.matmul %16, %12, %cst_8 {dimension_numbers = #tpu.dot_dimension_numbers<[1], [0], [0], [1], [0, 0, 1, 1], [], []>} : vector<8x32xbf16>, vector<32x128xbf16>, vector<8x128xf32> -> vector<8x128xf32>
    %18 = arith.addf %15, %17 : vector<8x128xf32>
    %19 = arith.mulf %18, %8 : vector<8x128xf32>
    %20 = math.tanh %19 : vector<8x128xf32>
    %21 = arith.mulf %20, %8 : vector<8x128xf32>
    %22 = arith.addf %21, %11 : vector<8x128xf32>
    %23 = vector.extract_strided_slice %22 {offsets = [0, 0], sizes = [8, 32], strides = [1, 1]} : vector<8x128xf32> to vector<8x32xf32>
    %24 = vector.extract_strided_slice %22 {offsets = [0, 32], sizes = [8, 32], strides = [1, 1]} : vector<8x128xf32> to vector<8x32xf32>
    %25 = vector.extract_strided_slice %22 {offsets = [0, 64], sizes = [8, 32], strides = [1, 1]} : vector<8x128xf32> to vector<8x32xf32>
    %26 = vector.extract_strided_slice %22 {offsets = [0, 96], sizes = [8, 32], strides = [1, 1]} : vector<8x128xf32> to vector<8x32xf32>
    %27 = arith.mulf %24, %14 : vector<8x32xf32>
    %28 = arith.mulf %23, %25 : vector<8x32xf32>
    %29 = arith.addf %27, %28 : vector<8x32xf32>
    %30 = math.tanh %29 : vector<8x32xf32>
    %31 = arith.mulf %26, %30 : vector<8x32xf32>
    %c8 = arith.constant 8 : index
    %c0_9 = arith.constant 0 : index
    %32 = vector.load %arg1[%c8, %c0_9] : memref<64x128xf32, #tpu.memory_space<vmem>>, vector<8x128xf32>
    %33 = arith.truncf %31 : vector<8x32xf32> to vector<8x32xbf16>
    %cst_10 = arith.constant dense<0.000000e+00> : vector<8x128xf32>
    %34 = tpu.matmul %33, %12, %cst_10 {dimension_numbers = #tpu.dot_dimension_numbers<[1], [0], [0], [1], [0, 0, 1, 1], [], []>} : vector<8x32xbf16>, vector<32x128xbf16>, vector<8x128xf32> -> vector<8x128xf32>
    %35 = arith.addf %32, %34 : vector<8x128xf32>
    %36 = arith.mulf %35, %8 : vector<8x128xf32>
    %37 = math.tanh %36 : vector<8x128xf32>
    %38 = arith.mulf %37, %8 : vector<8x128xf32>
    %39 = arith.addf %38, %11 : vector<8x128xf32>
    %40 = vector.extract_strided_slice %39 {offsets = [0, 0], sizes = [8, 32], strides = [1, 1]} : vector<8x128xf32> to vector<8x32xf32>
    %41 = vector.extract_strided_slice %39 {offsets = [0, 32], sizes = [8, 32], strides = [1, 1]} : vector<8x128xf32> to vector<8x32xf32>
    %42 = vector.extract_strided_slice %39 {offsets = [0, 64], sizes = [8, 32], strides = [1, 1]} : vector<8x128xf32> to vector<8x32xf32>
    %43 = vector.extract_strided_slice %39 {offsets = [0, 96], sizes = [8, 32], strides = [1, 1]} : vector<8x128xf32> to vector<8x32xf32>
    %44 = arith.mulf %41, %29 : vector<8x32xf32>
    %45 = arith.mulf %40, %42 : vector<8x32xf32>
    %46 = arith.addf %44, %45 : vector<8x32xf32>
    %47 = math.tanh %46 : vector<8x32xf32>
    %48 = arith.mulf %43, %47 : vector<8x32xf32>
    %c16 = arith.constant 16 : index
    %c0_11 = arith.constant 0 : index
    %49 = vector.load %arg1[%c16, %c0_11] : memref<64x128xf32, #tpu.memory_space<vmem>>, vector<8x128xf32>
    %50 = arith.truncf %48 : vector<8x32xf32> to vector<8x32xbf16>
    %cst_12 = arith.constant dense<0.000000e+00> : vector<8x128xf32>
    %51 = tpu.matmul %50, %12, %cst_12 {dimension_numbers = #tpu.dot_dimension_numbers<[1], [0], [0], [1], [0, 0, 1, 1], [], []>} : vector<8x32xbf16>, vector<32x128xbf16>, vector<8x128xf32> -> vector<8x128xf32>
    %52 = arith.addf %49, %51 : vector<8x128xf32>
    %53 = arith.mulf %52, %8 : vector<8x128xf32>
    %54 = math.tanh %53 : vector<8x128xf32>
    %55 = arith.mulf %54, %8 : vector<8x128xf32>
    %56 = arith.addf %55, %11 : vector<8x128xf32>
    %57 = vector.extract_strided_slice %56 {offsets = [0, 0], sizes = [8, 32], strides = [1, 1]} : vector<8x128xf32> to vector<8x32xf32>
    %58 = vector.extract_strided_slice %56 {offsets = [0, 32], sizes = [8, 32], strides = [1, 1]} : vector<8x128xf32> to vector<8x32xf32>
    %59 = vector.extract_strided_slice %56 {offsets = [0, 64], sizes = [8, 32], strides = [1, 1]} : vector<8x128xf32> to vector<8x32xf32>
    %60 = vector.extract_strided_slice %56 {offsets = [0, 96], sizes = [8, 32], strides = [1, 1]} : vector<8x128xf32> to vector<8x32xf32>
    %61 = arith.mulf %58, %46 : vector<8x32xf32>
    %62 = arith.mulf %57, %59 : vector<8x32xf32>
    %63 = arith.addf %61, %62 : vector<8x32xf32>
    %64 = math.tanh %63 : vector<8x32xf32>
    %65 = arith.mulf %60, %64 : vector<8x32xf32>
    %c24 = arith.constant 24 : index
    %c0_13 = arith.constant 0 : index
    %66 = vector.load %arg1[%c24, %c0_13] : memref<64x128xf32, #tpu.memory_space<vmem>>, vector<8x128xf32>
    %67 = arith.truncf %65 : vector<8x32xf32> to vector<8x32xbf16>
    %cst_14 = arith.constant dense<0.000000e+00> : vector<8x128xf32>
    %68 = tpu.matmul %67, %12, %cst_14 {dimension_numbers = #tpu.dot_dimension_numbers<[1], [0], [0], [1], [0, 0, 1, 1], [], []>} : vector<8x32xbf16>, vector<32x128xbf16>, vector<8x128xf32> -> vector<8x128xf32>
    %69 = arith.addf %66, %68 : vector<8x128xf32>
    %70 = arith.mulf %69, %8 : vector<8x128xf32>
    %71 = math.tanh %70 : vector<8x128xf32>
    %72 = arith.mulf %71, %8 : vector<8x128xf32>
    %73 = arith.addf %72, %11 : vector<8x128xf32>
    %74 = vector.extract_strided_slice %73 {offsets = [0, 0], sizes = [8, 32], strides = [1, 1]} : vector<8x128xf32> to vector<8x32xf32>
    %75 = vector.extract_strided_slice %73 {offsets = [0, 32], sizes = [8, 32], strides = [1, 1]} : vector<8x128xf32> to vector<8x32xf32>
    %76 = vector.extract_strided_slice %73 {offsets = [0, 64], sizes = [8, 32], strides = [1, 1]} : vector<8x128xf32> to vector<8x32xf32>
    %77 = vector.extract_strided_slice %73 {offsets = [0, 96], sizes = [8, 32], strides = [1, 1]} : vector<8x128xf32> to vector<8x32xf32>
    %78 = arith.mulf %75, %63 : vector<8x32xf32>
    %79 = arith.mulf %74, %76 : vector<8x32xf32>
    %80 = arith.addf %78, %79 : vector<8x32xf32>
    %81 = math.tanh %80 : vector<8x32xf32>
    %82 = arith.mulf %77, %81 : vector<8x32xf32>
    %c32 = arith.constant 32 : index
    %c0_15 = arith.constant 0 : index
    %83 = vector.load %arg1[%c32, %c0_15] : memref<64x128xf32, #tpu.memory_space<vmem>>, vector<8x128xf32>
    %84 = arith.truncf %82 : vector<8x32xf32> to vector<8x32xbf16>
    %cst_16 = arith.constant dense<0.000000e+00> : vector<8x128xf32>
    %85 = tpu.matmul %84, %12, %cst_16 {dimension_numbers = #tpu.dot_dimension_numbers<[1], [0], [0], [1], [0, 0, 1, 1], [], []>} : vector<8x32xbf16>, vector<32x128xbf16>, vector<8x128xf32> -> vector<8x128xf32>
    %86 = arith.addf %83, %85 : vector<8x128xf32>
    %87 = arith.mulf %86, %8 : vector<8x128xf32>
    %88 = math.tanh %87 : vector<8x128xf32>
    %89 = arith.mulf %88, %8 : vector<8x128xf32>
    %90 = arith.addf %89, %11 : vector<8x128xf32>
    %91 = vector.extract_strided_slice %90 {offsets = [0, 0], sizes = [8, 32], strides = [1, 1]} : vector<8x128xf32> to vector<8x32xf32>
    %92 = vector.extract_strided_slice %90 {offsets = [0, 32], sizes = [8, 32], strides = [1, 1]} : vector<8x128xf32> to vector<8x32xf32>
    %93 = vector.extract_strided_slice %90 {offsets = [0, 64], sizes = [8, 32], strides = [1, 1]} : vector<8x128xf32> to vector<8x32xf32>
    %94 = vector.extract_strided_slice %90 {offsets = [0, 96], sizes = [8, 32], strides = [1, 1]} : vector<8x128xf32> to vector<8x32xf32>
    %95 = arith.mulf %92, %80 : vector<8x32xf32>
    %96 = arith.mulf %91, %93 : vector<8x32xf32>
    %97 = arith.addf %95, %96 : vector<8x32xf32>
    %98 = math.tanh %97 : vector<8x32xf32>
    %99 = arith.mulf %94, %98 : vector<8x32xf32>
    %c40 = arith.constant 40 : index
    %c0_17 = arith.constant 0 : index
    %100 = vector.load %arg1[%c40, %c0_17] : memref<64x128xf32, #tpu.memory_space<vmem>>, vector<8x128xf32>
    %101 = arith.truncf %99 : vector<8x32xf32> to vector<8x32xbf16>
    %cst_18 = arith.constant dense<0.000000e+00> : vector<8x128xf32>
    %102 = tpu.matmul %101, %12, %cst_18 {dimension_numbers = #tpu.dot_dimension_numbers<[1], [0], [0], [1], [0, 0, 1, 1], [], []>} : vector<8x32xbf16>, vector<32x128xbf16>, vector<8x128xf32> -> vector<8x128xf32>
    %103 = arith.addf %100, %102 : vector<8x128xf32>
    %104 = arith.mulf %103, %8 : vector<8x128xf32>
    %105 = math.tanh %104 : vector<8x128xf32>
    %106 = arith.mulf %105, %8 : vector<8x128xf32>
    %107 = arith.addf %106, %11 : vector<8x128xf32>
    %108 = vector.extract_strided_slice %107 {offsets = [0, 0], sizes = [8, 32], strides = [1, 1]} : vector<8x128xf32> to vector<8x32xf32>
    %109 = vector.extract_strided_slice %107 {offsets = [0, 32], sizes = [8, 32], strides = [1, 1]} : vector<8x128xf32> to vector<8x32xf32>
    %110 = vector.extract_strided_slice %107 {offsets = [0, 64], sizes = [8, 32], strides = [1, 1]} : vector<8x128xf32> to vector<8x32xf32>
    %111 = vector.extract_strided_slice %107 {offsets = [0, 96], sizes = [8, 32], strides = [1, 1]} : vector<8x128xf32> to vector<8x32xf32>
    %112 = arith.mulf %109, %97 : vector<8x32xf32>
    %113 = arith.mulf %108, %110 : vector<8x32xf32>
    %114 = arith.addf %112, %113 : vector<8x32xf32>
    %115 = math.tanh %114 : vector<8x32xf32>
    %116 = arith.mulf %111, %115 : vector<8x32xf32>
    %c48 = arith.constant 48 : index
    %c0_19 = arith.constant 0 : index
    %117 = vector.load %arg1[%c48, %c0_19] : memref<64x128xf32, #tpu.memory_space<vmem>>, vector<8x128xf32>
    %118 = arith.truncf %116 : vector<8x32xf32> to vector<8x32xbf16>
    %cst_20 = arith.constant dense<0.000000e+00> : vector<8x128xf32>
    %119 = tpu.matmul %118, %12, %cst_20 {dimension_numbers = #tpu.dot_dimension_numbers<[1], [0], [0], [1], [0, 0, 1, 1], [], []>} : vector<8x32xbf16>, vector<32x128xbf16>, vector<8x128xf32> -> vector<8x128xf32>
    %120 = arith.addf %117, %119 : vector<8x128xf32>
    %121 = arith.mulf %120, %8 : vector<8x128xf32>
    %122 = math.tanh %121 : vector<8x128xf32>
    %123 = arith.mulf %122, %8 : vector<8x128xf32>
    %124 = arith.addf %123, %11 : vector<8x128xf32>
    %125 = vector.extract_strided_slice %124 {offsets = [0, 0], sizes = [8, 32], strides = [1, 1]} : vector<8x128xf32> to vector<8x32xf32>
    %126 = vector.extract_strided_slice %124 {offsets = [0, 32], sizes = [8, 32], strides = [1, 1]} : vector<8x128xf32> to vector<8x32xf32>
    %127 = vector.extract_strided_slice %124 {offsets = [0, 64], sizes = [8, 32], strides = [1, 1]} : vector<8x128xf32> to vector<8x32xf32>
    %128 = vector.extract_strided_slice %124 {offsets = [0, 96], sizes = [8, 32], strides = [1, 1]} : vector<8x128xf32> to vector<8x32xf32>
    %129 = arith.mulf %126, %114 : vector<8x32xf32>
    %130 = arith.mulf %125, %127 : vector<8x32xf32>
    %131 = arith.addf %129, %130 : vector<8x32xf32>
    %132 = math.tanh %131 : vector<8x32xf32>
    %133 = arith.mulf %128, %132 : vector<8x32xf32>
    %c56 = arith.constant 56 : index
    %c0_21 = arith.constant 0 : index
    %134 = vector.load %arg1[%c56, %c0_21] : memref<64x128xf32, #tpu.memory_space<vmem>>, vector<8x128xf32>
    %135 = arith.truncf %133 : vector<8x32xf32> to vector<8x32xbf16>
    %cst_22 = arith.constant dense<0.000000e+00> : vector<8x128xf32>
    %136 = tpu.matmul %135, %12, %cst_22 {dimension_numbers = #tpu.dot_dimension_numbers<[1], [0], [0], [1], [0, 0, 1, 1], [], []>} : vector<8x32xbf16>, vector<32x128xbf16>, vector<8x128xf32> -> vector<8x128xf32>
    %137 = arith.addf %134, %136 : vector<8x128xf32>
    %138 = arith.mulf %137, %8 : vector<8x128xf32>
    %139 = math.tanh %138 : vector<8x128xf32>
    %140 = arith.mulf %139, %8 : vector<8x128xf32>
    %141 = arith.addf %140, %11 : vector<8x128xf32>
    %142 = vector.extract_strided_slice %141 {offsets = [0, 0], sizes = [8, 32], strides = [1, 1]} : vector<8x128xf32> to vector<8x32xf32>
    %143 = vector.extract_strided_slice %141 {offsets = [0, 32], sizes = [8, 32], strides = [1, 1]} : vector<8x128xf32> to vector<8x32xf32>
    %144 = vector.extract_strided_slice %141 {offsets = [0, 64], sizes = [8, 32], strides = [1, 1]} : vector<8x128xf32> to vector<8x32xf32>
    %145 = vector.extract_strided_slice %141 {offsets = [0, 96], sizes = [8, 32], strides = [1, 1]} : vector<8x128xf32> to vector<8x32xf32>
    %146 = arith.mulf %143, %131 : vector<8x32xf32>
    %147 = arith.mulf %142, %144 : vector<8x32xf32>
    %148 = arith.addf %146, %147 : vector<8x32xf32>
    %149 = math.tanh %148 : vector<8x32xf32>
    %150 = arith.mulf %145, %149 : vector<8x32xf32>
    %151 = arith.truncf %150 : vector<8x32xf32> to vector<8x32xbf16>
    %c0_23 = arith.constant 0 : index
    %c0_24 = arith.constant 0 : index
    %152 = vector.load %arg3[%c0_23, %c0_24] : memref<32x128xbf16, #tpu.memory_space<vmem>>, vector<32x128xbf16>
    %cst_25 = arith.constant dense<0.000000e+00> : vector<8x128xf32>
    %153 = tpu.matmul %151, %152, %cst_25 {dimension_numbers = #tpu.dot_dimension_numbers<[1], [0], [0], [1], [0, 0, 1, 1], [], []>} : vector<8x32xbf16>, vector<32x128xbf16>, vector<8x128xf32> -> vector<8x128xf32>
    %c0_26 = arith.constant 0 : index
    %c0_27 = arith.constant 0 : index
    %154 = vector.load %arg4[%c0_26, %c0_27] : memref<1x128xf32, #tpu.memory_space<vmem>>, vector<1x128xf32>
    %155 = vector.broadcast %154 : vector<1x128xf32> to vector<8x128xf32>
    %156 = arith.addf %153, %155 : vector<8x128xf32>
    %c0_28 = arith.constant 0 : index
    %c0_29 = arith.constant 0 : index
    %157 = vector.load %arg5[%c0_28, %c0_29] : memref<8x128xf32, #tpu.memory_space<vmem>>, vector<8x128xf32>
    tpu.vector_store %arg5[%c0_28, %c0_29], %156 {strides = array<i32>} : memref<8x128xf32, #tpu.memory_space<vmem>>, vector<8x128xf32>,
    return
  }
  func.func @transform_0(%arg0: i32) -> (i32, i32) {
    %c0_i32 = arith.constant 0 : i32
    %c0_i32_0 = arith.constant 0 : i32
    return %arg0, %c0_i32 : i32, i32
  }
  func.func @transform_1(%arg0: i32) -> (i32, i32) {
    %c0_i32 = arith.constant 0 : i32
    %c0_i32_0 = arith.constant 0 : i32
    %c0_i32_1 = arith.constant 0 : i32
    return %c0_i32, %c0_i32_0 : i32, i32
  }
  func.func @transform_2(%arg0: i32) -> (i32, i32) {
    %c0_i32 = arith.constant 0 : i32
    %c0_i32_0 = arith.constant 0 : i32
    %c0_i32_1 = arith.constant 0 : i32
    return %c0_i32, %c0_i32_0 : i32, i32
  }
  func.func @transform_3(%arg0: i32) -> (i32, i32) {
    %c0_i32 = arith.constant 0 : i32
    %c0_i32_0 = arith.constant 0 : i32
    %c0_i32_1 = arith.constant 0 : i32
    return %c0_i32, %c0_i32_0 : i32, i32
  }
  func.func @transform_4(%arg0: i32) -> (i32, i32) {
    %c0_i32 = arith.constant 0 : i32
    %c0_i32_0 = arith.constant 0 : i32
    return %arg0, %c0_i32 : i32, i32
  }
}

</mosaic_0001>

<bundles_post_ra>
// kernel: rnn_forward.1
= control target key start
LH: loop header
LB: loop body
LE: loop exit
PB: predicated region body
PF: predicated region fallthrough
CT: control target
= control target key end

     0   :  { %v827_v0 = vmov 0.0   ;;  %vm828_vm0 = vmmov 0   ;;  %v829_v3 = vmov 0   ;;  %v18_v4 = vlaneseq  ;;  %s831_s20 = smov 64   ;;  %s832_s21 = smov 32   ;;  %s1024_s1 = inlined_call_operand.vmem [shape: bf16[32,128], index: 1, kind: input, shape index: {}]   ;;  %s1025_s0 = inlined_call_operand.vmem [shape: f32[64,128], index: 0, kind: input, shape index: {}]   ;;  %s1026_s2 = inlined_call_operand.vmem [shape: bf16[32,128], index: 2, kind: input, shape index: {}]   ;;  %s1027_s3 = inlined_call_operand.vmem [shape: f32[1,128], index: 3, kind: input, shape index: {}]   ;;  %s1028_s4 = inlined_call_operand.vmem [shape: f32[8,128], index: 4, kind: output, shape index: {}]  }
   0x1   :  { %713 = vmatprep.subr.bf16.mxu0 %v827_v0  ;;  %v862_v1 = vld [vmem:[%s1024_s1] sm:$0xff]   ;;  %717 = vmatprep.mubr.msk.bf16.mxu0 %vm828_vm0, %v827_v0  ;;  %v873_v2 = vld [vmem:[%s1024_s1 + $0x8] sm:$0xff]   ;;  %v830_v7 = vmov 0.5   ;;  %vm42_vm4 = vcmask 261120   ;;  %v178_v49 = vld [vmem:[%s1025_s0 + $0x10] sm:$0xff] }
   0x2   :  { %721 = vmatprep.subr.bf16.mxu1 %v827_v0  ;;  %725 = vmatprep.mubr.msk.bf16.mxu1 %vm828_vm0, %v827_v0  ;;  %v19_v5 = vand.u32 127, %v18_v4  ;;  %v29_v6 = vld [vmem:[%s1025_s0] sm:$0xff]  ;;  %v108_v29 = vld [vmem:[%s1025_s0 + $0x8] sm:$0xff] }
   0x3   :  { %714 = vmatpush3.bf16.msra.mxu0 %v862_v1  ;;  %722 = vmatpush3.bf16.msra.mxu1 %v862_v1 }
   0x4   :  { %715 = vmatprep.subr.bf16.mxu0 %v827_v0  ;;  %723 = vmatprep.subr.bf16.mxu1 %v827_v0  ;;  %vm20_vm1 = vcmp.ge.s32.totalorder %v19_v5, 64  ;;  %vm21_vm2 = vcmp.lt.s32.totalorder %v19_v5, 96 }
   0x5   :  { %vm22_vm3 = vmand %vm20_vm1, %vm21_vm2 }
   0x6   :  { %v891_v8 = vsel %vm22_vm3, 1.0, %v830_v7  ;;  %v894_v16 = vsel %vm22_vm3, 0.0, %v830_v7 }
   0x7   :  { %716 = vmatpush3.bf16.msra.mxu0 %v873_v2  ;;  %724 = vmatpush3.bf16.msra.mxu1 %v873_v2 }
   0x8   :  { %729 = vmatprep.subr.bf16.mxu0 %v827_v0  ;;  %737 = vmatprep.subr.bf16.mxu1 %v827_v0 }
   0xa   :  { %718 = vmatmul.mubr.bf16.vlgmr.msra.gmra.mrb[0].mxu0 %v829_v3 }
   0xb   :  { %730 = vmatpush3.bf16.msra.mxu0 %v862_v1  ;;  %733 = vmatprep.mubr.msk.bf16.mxu0 %vm828_vm0, %v827_v0 }
   0xc   :  { %731 = vmatprep.subr.bf16.mxu0 %v827_v0 }
   0xf   :  { %732 = vmatpush3.bf16.msra.mxu0 %v873_v2 }
  0x10   :  { %745 = vmatprep.subr.bf16.mxu0 %v827_v0 }
  0xdd   :  { %v80_v9 = vpop.f32.mrb[0].mxu0 }
  0xde   :  { %v86_v10 = vadd.f32 %v80_v9, %v29_v6  ;;  %v719_v11 = vpop.f32.mrb[1].mxu0  ;;  %v248_v9 = vld [vmem:[%s1025_s0 + $0x18] sm:$0xff] }
  0xdf   :  { %v83_v12 = vpop.f32.mrb[2].mxu0 }
  0xe0   :  { %v87_v13 = vmul.f32 %v86_v10, %v891_v8  ;;  %v720_v14 = vpop.f32.mrb[3].mxu0 }
  0xe2   :  { %795 = vtanh.f32 %v87_v13 }
  0xec   :  { %v796_v15 = vpop.eup %795 }
  0xed   :  { %v89_v17 = vmul.f32 %v796_v15, %v891_v8 }
  0xef   :  { %v90_v18 = vadd.f32 %v89_v17, %v894_v16 }
  0xf1   :  { %93 = vrot.lane.b32.xlu0 %v90_v18, %s831_s20  ;;  %v91_v21 = vmul.f32 0.0, %v90_v18 }
 0x163   :  { %v94_v19 = vpop.permute.xlu0 %93 }
 0x164   :  { %v96_v20 = vmul.f32 %v94_v19, %v90_v18 }
 0x166   :  { %98 = vrot.lane.b32.xlu0 %v96_v20, %s832_s21 }
 0x1d8   :  { %v99_v22 = vpop.permute.xlu0 %98 }
 0x1d9   :  { %v101_v23 = vadd.f32 %v99_v22, %v91_v21 }
 0x1db   :  { %797 = vtanh.f32 %v101_v23 }
 0x1e5   :  { %v798_v24 = vpop.eup %797 }
 0x1e6   :  { %104 = vrot.lane.b32.xlu1 %v798_v24, %s831_s20 }
 0x258   :  { %v105_v25 = vpop.permute.xlu1 %104 }
 0x259   :  { %v107_v26 = vmul.f32 %v105_v25, %v90_v18 }
 0x25b   :  { %v109_v27 = vpack.c.bf16 %v107_v26, %v107_v26 }
 0x25d   :  { %111 = vrot.lane.b32.xlu1 %v109_v27, %s832_s21 }
 0x2cf   :  { %v112_v28 = vpop.permute.xlu1 %111 }
 0x2d0   :  { %726 = vmatmul.mubr.msk.bf16.vlgmr.msra.gmra.mrb[0].mxu1 %vm42_vm4, %v112_v28 }
 0x2d1   :  { %738 = vmatpush3.bf16.msra.mxu1 %v862_v1  ;;  %741 = vmatprep.mubr.msk.bf16.mxu1 %vm828_vm0, %v827_v0 }
 0x2d2   :  { %739 = vmatprep.subr.bf16.mxu1 %v827_v0 }
 0x2d5   :  { %740 = vmatpush3.bf16.msra.mxu1 %v873_v2 }
 0x2d6   :  { %753 = vmatprep.subr.bf16.mxu1 %v827_v0 }
 0x3a3   :  { %v150_v30 = vpop.f32.mrb[0].mxu1 }
 0x3a4   :  { %v156_v31 = vadd.f32 %v150_v30, %v108_v29  ;;  %v727_v32 = vpop.f32.mrb[1].mxu1  ;;  %v318_v30 = vld [vmem:[%s1025_s0 + $0x20] sm:$0xff] }
 0x3a5   :  { %v153_v33 = vpop.f32.mrb[2].mxu1 }
 0x3a6   :  { %v157_v34 = vmul.f32 %v156_v31, %v891_v8  ;;  %v728_v35 = vpop.f32.mrb[3].mxu1 }
 0x3a8   :  { %799 = vtanh.f32 %v157_v34 }
 0x3b2   :  { %v800_v36 = vpop.eup %799 }
 0x3b3   :  { %v159_v37 = vmul.f32 %v800_v36, %v891_v8 }
 0x3b5   :  { %v160_v38 = vadd.f32 %v159_v37, %v894_v16 }
 0x3b7   :  { %163 = vrot.lane.b32.xlu0 %v160_v38, %s831_s20  ;;  %v161_v41 = vmul.f32 %v160_v38, %v101_v23 }
 0x429   :  { %v164_v39 = vpop.permute.xlu0 %163 }
 0x42a   :  { %v166_v40 = vmul.f32 %v164_v39, %v160_v38 }
 0x42c   :  { %168 = vrot.lane.b32.xlu1 %v166_v40, %s832_s21 }
 0x49e   :  { %v169_v42 = vpop.permute.xlu1 %168 }
 0x49f   :  { %v171_v43 = vadd.f32 %v169_v42, %v161_v41 }
 0x4a1   :  { %801 = vtanh.f32 %v171_v43 }
 0x4ab   :  { %v802_v44 = vpop.eup %801 }
 0x4ac   :  { %174 = vrot.lane.b32.xlu0 %v802_v44, %s831_s20 }
 0x51e   :  { %v175_v45 = vpop.permute.xlu0 %174 }
 0x51f   :  { %v177_v46 = vmul.f32 %v175_v45, %v160_v38 }
 0x521   :  { %v179_v47 = vpack.c.bf16 %v177_v46, %v177_v46 }
 0x523   :  { %181 = vrot.lane.b32.xlu1 %v179_v47, %s832_s21 }
 0x595   :  { %v182_v48 = vpop.permute.xlu1 %181 }
 0x596   :  { %734 = vmatmul.mubr.msk.bf16.vlgmr.msra.gmra.mrb[4].mxu0 %vm42_vm4, %v182_v48 }
 0x597   :  { %746 = vmatpush3.bf16.msra.mxu0 %v862_v1  ;;  %749 = vmatprep.mubr.msk.bf16.mxu0 %vm828_vm0, %v827_v0 }
 0x598   :  { %747 = vmatprep.subr.bf16.mxu0 %v827_v0 }
 0x59b   :  { %748 = vmatpush3.bf16.msra.mxu0 %v873_v2 }
 0x59c   :  { %761 = vmatprep.subr.bf16.mxu0 %v827_v0 }
 0x669   :  { %v220_v50 = vpop.f32.mrb[4].mxu0 }
 0x66a   :  { %v226_v51 = vadd.f32 %v220_v50, %v178_v49  ;;  %v735_v52 = vpop.f32.mrb[5].mxu0  ;;  %v388_v50 = vld [vmem:[%s1025_s0 + $0x28] sm:$0xff] }
 0x66b   :  { %v223_v53 = vpop.f32.mrb[6].mxu0 }
 0x66c   :  { %v227_v54 = vmul.f32 %v226_v51, %v891_v8  ;;  %v736_v55 = vpop.f32.mrb[7].mxu0 }
 0x66e   :  { %803 = vtanh.f32 %v227_v54 }
 0x678   :  { %v804_v56 = vpop.eup %803 }
 0x679   :  { %v229_v57 = vmul.f32 %v804_v56, %v891_v8 }
 0x67b   :  { %v230_v58 = vadd.f32 %v229_v57, %v894_v16 }
 0x67d   :  { %233 = vrot.lane.b32.xlu0 %v230_v58, %s831_s20  ;;  %v231_v61 = vmul.f32 %v230_v58, %v171_v43 }
 0x6ef   :  { %v234_v59 = vpop.permute.xlu0 %233 }
 0x6f0   :  { %v236_v60 = vmul.f32 %v234_v59, %v230_v58 }
 0x6f2   :  { %238 = vrot.lane.b32.xlu1 %v236_v60, %s832_s21 }
 0x764   :  { %v239_v62 = vpop.permute.xlu1 %238 }
 0x765   :  { %v241_v63 = vadd.f32 %v239_v62, %v231_v61 }
 0x767   :  { %805 = vtanh.f32 %v241_v63 }
 0x771   :  { %v806_v3 = vpop.eup %805 }
 0x772   :  { %244 = vrot.lane.b32.xlu0 %v806_v3, %s831_s20 }
 0x7e4   :  { %v245_v4 = vpop.permute.xlu0 %244 }
 0x7e5   :  { %v247_v5 = vmul.f32 %v245_v4, %v230_v58 }
 0x7e7   :  { %v249_v6 = vpack.c.bf16 %v247_v5, %v247_v5 }
 0x7e9   :  { %251 = vrot.lane.b32.xlu1 %v249_v6, %s832_s21 }
 0x85b   :  { %v252_v7 = vpop.permute.xlu1 %251 }
 0x85c   :  { %742 = vmatmul.mubr.msk.bf16.vlgmr.msra.gmra.mrb[4].mxu1 %vm42_vm4, %v252_v7  ;;  %v458_v7 = vld [vmem:[%s1025_s0 + $0x30] sm:$0xff] }
 0x85d   :  { %754 = vmatpush3.bf16.msra.mxu1 %v862_v1  ;;  %757 = vmatprep.mubr.msk.bf16.mxu1 %vm828_vm0, %v827_v0 }
 0x85e   :  { %755 = vmatprep.subr.bf16.mxu1 %v827_v0 }
 0x861   :  { %756 = vmatpush3.bf16.msra.mxu1 %v873_v2 }
 0x862   :  { %769 = vmatprep.subr.bf16.mxu1 %v827_v0 }
 0x92f   :  { %v290_v10 = vpop.f32.mrb[4].mxu1 }
 0x930   :  { %v296_v11 = vadd.f32 %v290_v10, %v248_v9  ;;  %v743_v12 = vpop.f32.mrb[5].mxu1 }
 0x931   :  { %v293_v13 = vpop.f32.mrb[6].mxu1 }
 0x932   :  { %v297_v14 = vmul.f32 %v296_v11, %v891_v8  ;;  %v744_v15 = vpop.f32.mrb[7].mxu1 }
 0x934   :  { %807 = vtanh.f32 %v297_v14 }
 0x93e   :  { %v808_v17 = vpop.eup %807 }
 0x93f   :  { %v299_v18 = vmul.f32 %v808_v17, %v891_v8 }
 0x941   :  { %v300_v19 = vadd.f32 %v299_v18, %v894_v16 }
 0x943   :  { %303 = vrot.lane.b32.xlu0 %v300_v19, %s831_s20  ;;  %v301_v22 = vmul.f32 %v300_v19, %v241_v63 }
 0x9b5   :  { %v304_v20 = vpop.permute.xlu0 %303 }
 0x9b6   :  { %v306_v21 = vmul.f32 %v304_v20, %v300_v19 }
 0x9b8   :  { %308 = vrot.lane.b32.xlu1 %v306_v21, %s832_s21 }
 0xa2a   :  { %v309_v23 = vpop.permute.xlu1 %308 }
 0xa2b   :  { %v311_v24 = vadd.f32 %v309_v23, %v301_v22 }
 0xa2d   :  { %809 = vtanh.f32 %v311_v24 }
 0xa37   :  { %v810_v25 = vpop.eup %809 }
 0xa38   :  { %314 = vrot.lane.b32.xlu0 %v810_v25, %s831_s20 }
 0xaaa   :  { %v315_v26 = vpop.permute.xlu0 %314 }
 0xaab   :  { %v317_v27 = vmul.f32 %v315_v26, %v300_v19 }
 0xaad   :  { %v319_v28 = vpack.c.bf16 %v317_v27, %v317_v27 }
 0xaaf   :  { %321 = vrot.lane.b32.xlu1 %v319_v28, %s832_s21 }
 0xb21   :  { %v322_v29 = vpop.permute.xlu1 %321 }
 0xb22   :  { %750 = vmatmul.mubr.msk.bf16.vlgmr.msra.gmra.mrb[8].mxu0 %vm42_vm4, %v322_v29  ;;  %v528_v29 = vld [vmem:[%s1025_s0 + $0x38] sm:$0xff] }
 0xb23   :  { %762 = vmatpush3.bf16.msra.mxu0 %v862_v1  ;;  %765 = vmatprep.mubr.msk.bf16.mxu0 %vm828_vm0, %v827_v0 }
 0xb24   :  { %763 = vmatprep.subr.bf16.mxu0 %v827_v0 }
 0xb27   :  { %764 = vmatpush3.bf16.msra.mxu0 %v873_v2 }
 0xb28   :  { %777 = vmatprep.subr.bf16.mxu0 %v827_v0 }
 0xbf5   :  { %v360_v31 = vpop.f32.mrb[8].mxu0 }
 0xbf6   :  { %v366_v32 = vadd.f32 %v360_v31, %v318_v30  ;;  %v751_v33 = vpop.f32.mrb[9].mxu0 }
 0xbf7   :  { %v363_v34 = vpop.f32.mrb[10].mxu0 }
 0xbf8   :  { %v367_v35 = vmul.f32 %v366_v32, %v891_v8  ;;  %v752_v36 = vpop.f32.mrb[11].mxu0 }
 0xbfa   :  { %811 = vtanh.f32 %v367_v35 }
 0xc04   :  { %v812_v37 = vpop.eup %811 }
 0xc05   :  { %v369_v38 = vmul.f32 %v812_v37, %v891_v8 }
 0xc07   :  { %v370_v39 = vadd.f32 %v369_v38, %v894_v16 }
 0xc09   :  { %373 = vrot.lane.b32.xlu0 %v370_v39, %s831_s20  ;;  %v371_v42 = vmul.f32 %v370_v39, %v311_v24 }
 0xc7b   :  { %v374_v40 = vpop.permute.xlu0 %373 }
 0xc7c   :  { %v376_v41 = vmul.f32 %v374_v40, %v370_v39 }
 0xc7e   :  { %378 = vrot.lane.b32.xlu1 %v376_v41, %s832_s21 }
 0xcf0   :  { %v379_v43 = vpop.permute.xlu1 %378 }
 0xcf1   :  { %v381_v44 = vadd.f32 %v379_v43, %v371_v42 }
 0xcf3   :  { %813 = vtanh.f32 %v381_v44 }
 0xcfd   :  { %v814_v45 = vpop.eup %813 }
 0xcfe   :  { %384 = vrot.lane.b32.xlu0 %v814_v45, %s831_s20 }
 0xd70   :  { %v385_v46 = vpop.permute.xlu0 %384 }
 0xd71   :  { %v387_v47 = vmul.f32 %v385_v46, %v370_v39 }
 0xd73   :  { %v389_v48 = vpack.c.bf16 %v387_v47, %v387_v47 }
 0xd75   :  { %391 = vrot.lane.b32.xlu1 %v389_v48, %s832_s21 }
 0xde7   :  { %v392_v49 = vpop.permute.xlu1 %391 }
 0xde8   :  { %758 = vmatmul.mubr.msk.bf16.vlgmr.msra.gmra.mrb[8].mxu1 %vm42_vm4, %v392_v49  ;;  %v682_v49 = vld [vmem:[%s1027_s3] ss:$0 sm:$0xff] }
 0xde9   :  { %770 = vmatpush3.bf16.msra.mxu1 %v862_v1  ;;  %773 = vmatprep.mubr.msk.bf16.mxu1 %vm828_vm0, %v827_v0 }
 0xdea   :  { %771 = vmatprep.subr.bf16.mxu1 %v827_v0 }
 0xded   :  { %772 = vmatpush3.bf16.msra.mxu1 %v873_v2 }
 0xebb   :  { %v430_v51 = vpop.f32.mrb[8].mxu1 }
 0xebc   :  { %v436_v52 = vadd.f32 %v430_v51, %v388_v50  ;;  %v759_v53 = vpop.f32.mrb[9].mxu1 }
 0xebd   :  { %v433_v54 = vpop.f32.mrb[10].mxu1 }
 0xebe   :  { %v437_v55 = vmul.f32 %v436_v52, %v891_v8  ;;  %v760_v56 = vpop.f32.mrb[11].mxu1 }
 0xec0   :  { %815 = vtanh.f32 %v437_v55 }
 0xeca   :  { %v816_v1 = vpop.eup %815 }
 0xecb   :  { %v439_v57 = vmul.f32 %v816_v1, %v891_v8 }
 0xecd   :  { %v440_v58 = vadd.f32 %v439_v57, %v894_v16 }
 0xecf   :  { %443 = vrot.lane.b32.xlu0 %v440_v58, %s831_s20  ;;  %v441_v60 = vmul.f32 %v440_v58, %v381_v44  ;;  %v793_v44 = vld [vmem:[%s1026_s2] sm:$0xff]  }
 0xf41   :  { %v444_v2 = vpop.permute.xlu0 %443 }
 0xf42   :  { %v446_v59 = vmul.f32 %v444_v2, %v440_v58 }
 0xf44   :  { %448 = vrot.lane.b32.xlu1 %v446_v59, %s832_s21 }
 0xfb6   :  { %v449_v61 = vpop.permute.xlu1 %448 }
 0xfb7   :  { %v451_v62 = vadd.f32 %v449_v61, %v441_v60 }
 0xfb9   :  { %817 = vtanh.f32 %v451_v62 }
 0xfc3   :  { %v818_v63 = vpop.eup %817 }
 0xfc4   :  { %454 = vrot.lane.b32.xlu0 %v818_v63, %s831_s20 }
0x1036   :  { %v455_v3 = vpop.permute.xlu0 %454 }
0x1037   :  { %v457_v4 = vmul.f32 %v455_v3, %v440_v58 }
0x1039   :  { %v459_v5 = vpack.c.bf16 %v457_v4, %v457_v4 }
0x103b   :  { %461 = vrot.lane.b32.xlu1 %v459_v5, %s832_s21 }
0x10ad   :  { %v462_v6 = vpop.permute.xlu1 %461 }
0x10ae   :  { %766 = vmatmul.mubr.msk.bf16.vlgmr.msra.gmra.mrb[12].mxu0 %vm42_vm4, %v462_v6 }
0x10af   :  { %781 = vmatprep.mubr.msk.bf16.mxu0 %vm828_vm0, %v827_v0  ;;  %778 = vmatpush3.bf16.msra.mxu0 %v793_v44 }
0x10b0   :  { %779 = vmatprep.subr.bf16.mxu0 %v827_v0 }
0x1181   :  { %v500_v9 = vpop.f32.mrb[12].mxu0 }
0x1182   :  { %v506_v10 = vadd.f32 %v500_v9, %v458_v7  ;;  %v767_v11 = vpop.f32.mrb[13].mxu0 }
0x1183   :  { %v503_v12 = vpop.f32.mrb[14].mxu0 }
0x1184   :  { %v507_v13 = vmul.f32 %v506_v10, %v891_v8  ;;  %v768_v14 = vpop.f32.mrb[15].mxu0 }
0x1186   :  { %819 = vtanh.f32 %v507_v13 }
0x1190   :  { %v820_v15 = vpop.eup %819 }
0x1191   :  { %v509_v17 = vmul.f32 %v820_v15, %v891_v8 }
0x1193   :  { %v510_v18 = vadd.f32 %v509_v17, %v894_v16 }
0x1195   :  { %513 = vrot.lane.b32.xlu0 %v510_v18, %s831_s20  ;;  %v511_v21 = vmul.f32 %v510_v18, %v451_v62 }
0x1207   :  { %v514_v19 = vpop.permute.xlu0 %513 }
0x1208   :  { %v516_v20 = vmul.f32 %v514_v19, %v510_v18 }
0x120a   :  { %518 = vrot.lane.b32.xlu1 %v516_v20, %s832_s21 }
0x127c   :  { %v519_v22 = vpop.permute.xlu1 %518 }
0x127d   :  { %v521_v23 = vadd.f32 %v519_v22, %v511_v21 }
0x127f   :  { %821 = vtanh.f32 %v521_v23 }
0x1289   :  { %v822_v24 = vpop.eup %821 }
0x128a   :  { %524 = vrot.lane.b32.xlu0 %v822_v24, %s831_s20 }
0x12fc   :  { %v525_v25 = vpop.permute.xlu0 %524 }
0x12fd   :  { %v527_v26 = vmul.f32 %v525_v25, %v510_v18 }
0x12ff   :  { %v529_v27 = vpack.c.bf16 %v527_v26, %v527_v26 }
0x1301   :  { %531 = vrot.lane.b32.xlu1 %v529_v27, %s832_s21 }
0x1373   :  { %v532_v28 = vpop.permute.xlu1 %531 }
0x1374   :  { %774 = vmatmul.mubr.msk.bf16.vlgmr.msra.gmra.mrb[12].mxu1 %vm42_vm4, %v532_v28 }
0x1447   :  { %v570_v30 = vpop.f32.mrb[12].mxu1 }
0x1448   :  { %v576_v31 = vadd.f32 %v570_v30, %v528_v29  ;;  %v775_v32 = vpop.f32.mrb[13].mxu1 }
0x1449   :  { %v573_v33 = vpop.f32.mrb[14].mxu1 }
0x144a   :  { %v577_v34 = vmul.f32 %v576_v31, %v891_v8  ;;  %v776_v35 = vpop.f32.mrb[15].mxu1 }
0x144c   :  { %823 = vtanh.f32 %v577_v34 }
0x1456   :  { %v824_v36 = vpop.eup %823 }
0x1457   :  { %v579_v37 = vmul.f32 %v824_v36, %v891_v8  ;;  %v794_v8 = vld [vmem:[%s1026_s2 + $0x8] sm:$0xff]  }
0x1458   :  { %780 = vmatpush3.bf16.msra.mxu0 %v794_v8 }
0x1459   :  { %v580_v38 = vadd.f32 %v579_v37, %v894_v16 }
0x145b   :  { %583 = vrot.lane.b32.xlu0 %v580_v38, %s831_s20  ;;  %v581_v41 = vmul.f32 %v580_v38, %v521_v23 }
0x14cd   :  { %v584_v39 = vpop.permute.xlu0 %583 }
0x14ce   :  { %v586_v40 = vmul.f32 %v584_v39, %v580_v38 }
0x14d0   :  { %588 = vrot.lane.b32.xlu1 %v586_v40, %s832_s21 }
0x1542   :  { %v589_v42 = vpop.permute.xlu1 %588 }
0x1543   :  { %v591_v43 = vadd.f32 %v589_v42, %v581_v41 }
0x1545   :  { %825 = vtanh.f32 %v591_v43 }
0x154f   :  { %v826_v16 = vpop.eup %825 }
0x1550   :  { %594 = vrot.lane.b32.xlu0 %v826_v16, %s831_s20 }
0x15c2   :  { %v595_v45 = vpop.permute.xlu0 %594 }
0x15c3   :  { %v597_v46 = vmul.f32 %v595_v45, %v580_v38 }
0x15c5   :  { %v598_v47 = vpack.c.bf16 %v597_v46, %v597_v46 }
0x15c7   :  { %611 = vrot.lane.b32.xlu1 %v598_v47, %s832_s21 }
0x1639   :  { %v612_v48 = vpop.permute.xlu1 %611 }
0x163a   :  { %782 = vmatmul.mubr.msk.bf16.vlgmr.msra.gmra.mrb[16].mxu0 %vm42_vm4, %v612_v48 }
0x170d   :  { %v662_v50 = vpop.f32.mrb[16].mxu0 }
0x170e   :  { %v663_v51 = vadd.f32 %v682_v49, %v662_v50  ;;  %v783_v52 = vpop.f32.mrb[17].mxu0 }
0x170f   :  { %v665_v0 = vpop.f32.mrb[18].mxu0 }
0x1710   :  { %668 = vst [vmem:[%s1028_s4] sm:$0xff] %v663_v51  ;;  %v784_v53 = vpop.f32.mrb[19].mxu0 }

</bundles_post_ra>
